<compile_context>
chip_gen: v7x
topology: tpu7x:2x2x1
jax: 0.10.0
libtpu: 0.0.40
codegen_flags: <defaults>
</compile_context>

<pallas_src>
import functools

import jax
import jax.numpy as jnp
import numpy as np
from jax.experimental import pallas as pl
from jax.experimental.pallas import tpu as pltpu


def conv_relu_kernel(w_ref, p_ref, o_ref):
    # w_ref: (C_out, K)      flattened conv weight (K = C_in*KH*KW), resident
    # p_ref: (K, tile_cols)  im2col patch columns for this grid step
    # o_ref: (C_out, tile_cols)
    y = jnp.dot(
        w_ref[...], p_ref[...],
        preferred_element_type=jnp.float32,
        precision=jax.lax.Precision.HIGHEST,   # keep f32 accuracy on bf16 MXUs
    )
    o_ref[...] = jnp.maximum(y, 0.0).astype(o_ref.dtype)


def _round_up(x, m):
    return ((x + m - 1) // m) * m


def _tpu_hw():
    """(physical VMEM bytes, has >=2 TensorCores per chip). Robust fallbacks."""
    physical_vmem = 64 * 1024 * 1024      # conservative (v7x physical)
    multi_tc = False
    kind = ""
    try:
        kind = jax.devices()[0].device_kind.lower()
    except Exception:
        pass
    if "v7" in kind:
        multi_tc = True                   # 2 TensorCores / chip
    elif ("v5" in kind) or ("v6" in kind):
        physical_vmem = 128 * 1024 * 1024
    try:
        info = pltpu.get_tpu_info()
        physical_vmem = int(getattr(info, "vmem_capacity_bytes", physical_vmem))
    except Exception:
        pass
    return physical_vmem, multi_tc


def _pick_col_tile(total_cols, kdim, c_out, vmem_budget_bytes, multi_tc,
                   itemsize=4):
    """Largest multiple-of-128 column tile that fits the VMEM budget.

    On single-TC chips (v5e/v6e) the grid is a serial loop, so we just take
    the biggest tile. On v7x we split into >=2 blocks only when each block's
    work is large enough to amortize the per-step overhead.
    """
    cols128 = _round_up(total_cols, 128)
    # Pipelined per-step VMEM: double-buffered patch block + output block.
    per_col = 2 * (kdim + c_out) * itemsize
    weight_bytes = c_out * kdim * itemsize        # resident weight (1 buffer)
    avail = max(vmem_budget_bytes - weight_bytes, per_col * 128)
    cap = max((avail // per_col) // 128 * 128, 128)
    cap = min(cap, 8192)                          # keep some pipeline steps
    tile = min(cap, cols128)
    if (multi_tc and tile >= cols128
            and cols128 * kdim * itemsize > (4 << 20)):
        tile = _round_up(pl.cdiv(cols128, 2), 128)
    return tile


def conv_relu(x, w, *, stride=1, pad=1, dilation=1):
    """F.relu(Conv2d(x, w, bias=False, stride, padding=pad, dilation)).

    x: (N, C_in, H, W) float32, w: (C_out, C_in, KH, KW) float32.
    Returns (N, C_out, Ho, Wo) float32.
    """
    N, C_in, H, W = x.shape
    C_out, C_in_w, KH, KW = w.shape
    assert C_in_w == C_in
    Ho = (H + 2 * pad - dilation * (KH - 1) - 1) // stride + 1
    Wo = (W + 2 * pad - dilation * (KW - 1) - 1) // stride + 1

    # --- wrapper-side im2col, single 1x-input-bytes relayout ----------------
    # Transpose the RAW input once (1x bytes), then tap; stacking the taps on
    # axis=1 makes the final reshape to (C_in*KH*KW, N*Ho*Wo) contiguous/free.
    xt = jnp.transpose(x, (1, 0, 2, 3))                      # (C_in, N, H, W)
    xp = jnp.pad(xt, ((0, 0), (0, 0), (pad, pad), (pad, pad)))
    taps = []
    for kh in range(KH):
        for kw in range(KW):
            h0 = kh * dilation
            w0 = kw * dilation
            taps.append(xp[:, :,
                           h0:h0 + (Ho - 1) * stride + 1:stride,
                           w0:w0 + (Wo - 1) * stride + 1:stride])
    K2 = KH * KW
    Kdim = C_in * K2
    # (C_in, KH*KW, N, Ho, Wo) -> (C_in*KH*KW, N*Ho*Wo); row order (c_in major,
    # then kh, kw) matches w.reshape(C_out, C_in*KH*KW).
    patches = jnp.stack(taps, axis=1).reshape(Kdim, N * Ho * Wo)

    total_cols = N * Ho * Wo
    physical_vmem, multi_tc = _tpu_hw()
    tile = _pick_col_tile(total_cols, Kdim, C_out,
                          vmem_budget_bytes=physical_vmem // 2,
                          multi_tc=multi_tc,
                          itemsize=jnp.dtype(x.dtype).itemsize)
    # Pick the tile first, then pad columns up to a multiple of it, so the
    # tile never degrades because of awkward factors of N*Ho*Wo.
    cols_padded = _round_up(total_cols, tile)
    if cols_padded != total_cols:
        patches = jnp.pad(patches, ((0, 0), (0, cols_padded - total_cols)))
    grid = (cols_padded // tile,)

    w_flat = w.reshape(C_out, Kdim).astype(x.dtype)
    vmem_limit = int(max(min(physical_vmem * 3 // 4, 100 << 20), 16 << 20))

    def build(single_buffer_weight):
        w_kwargs = {}
        if single_buffer_weight:
            # Weight index_map is constant -> never re-fetched; one buffer is
            # enough and frees ~C_out*Kdim*4B of VMEM for a bigger column tile.
            w_kwargs["pipeline_mode"] = pl.Buffered(1)
        return pl.pallas_call(
            conv_relu_kernel,
            out_shape=jax.ShapeDtypeStruct((C_out, cols_padded), x.dtype),
            grid_spec=pltpu.PrefetchScalarGridSpec(
                num_scalar_prefetch=0,
                grid=grid,
                in_specs=[
                    # flat weight slab, resident across all grid steps
                    pl.BlockSpec((C_out, Kdim), lambda j: (0, 0), **w_kwargs),
                    # one lane-dense column block of the patch matrix per step
                    pl.BlockSpec((Kdim, tile), lambda j: (0, j)),
                ],
                out_specs=pl.BlockSpec((C_out, tile), lambda j: (0, j)),
            ),
            compiler_params=pltpu.CompilerParams(
                dimension_semantics=("parallel",),
                vmem_limit_bytes=vmem_limit),
        )

    try:
        out2d = build(True)(w_flat, patches)
    except Exception:
        # Fallback if this JAX build rejects pipeline_mode=pl.Buffered(1).
        out2d = build(False)(w_flat, patches)

    # Network-boundary relayout (keep the 2D channel-major form when chaining).
    out = out2d[:, :total_cols].reshape(C_out, N, Ho, Wo)
    return jnp.transpose(out, (1, 0, 2, 3))


def _reference(x, w, *, stride=1, pad=1, dilation=1):
    y = jax.lax.conv_general_dilated(
        x, w, window_strides=(stride, stride),
        padding=[(pad, pad), (pad, pad)],
        rhs_dilation=(dilation, dilation),
        dimension_numbers=("NCHW", "OIHW", "NCHW"),
        precision=jax.lax.Precision.HIGHEST,
    )
    return jnp.maximum(y, 0.0)


if __name__ == "__main__":
    # ConvReLU(in_channels=4, out_channels=8, kernel_size=3, stride=1, pad=1)
    N, C_in, C_out, H, W, K = 2, 4, 8, 16, 16, 3

    key = jax.random.PRNGKey(0)
    kx, kw = jax.random.split(key)
    x = jax.random.normal(kx, (N, C_in, H, W), dtype=jnp.float32)
    # deterministic kaiming-ish init for the conv weight (no bias)
    fan_in = C_in * K * K
    w = jax.random.normal(kw, (C_out, C_in, K, K), dtype=jnp.float32) * (
        (2.0 / fan_in) ** 0.5)

    out = conv_relu(x, w, stride=1, pad=1, dilation=1)
    out = jax.block_until_ready(out)

    ref = _reference(x, w, stride=1, pad=1, dilation=1)
    np.testing.assert_allclose(np.asarray(out), np.asarray(ref),
                               rtol=1e-4, atol=1e-4)

    print("KERNEL_OK")
</pallas_src>

<mosaic_0001>
module attributes {stable_mosaic.version = 11 : i64} {
  func.func @conv_relu_kernel(%arg0: i32, %arg1: memref<8x36xf32, #tpu.memory_space<vmem>>, %arg2: memref<36x512xf32, #tpu.memory_space<vmem>>, %arg3: memref<8x512xf32, #tpu.memory_space<vmem>>) attributes {dimension_semantics = [#tpu.dimension_semantics<parallel>], iteration_bounds = array<i64: 1>, scalar_prefetch = 0 : i64, scratch_operands = 0 : i64, tpu.core_type = #tpu.core_type<tc>, window_params = [{pipeline_mode = #tpu.pipeline_mode<synchronous>, transform_indices = @transform_0, window_bounds = array<i64: 8, 36>}, {transform_indices = @transform_1, window_bounds = array<i64: 36, 512>}, {transform_indices = @transform_2, window_bounds = array<i64: 8, 512>}]} {
    %c0 = arith.constant 0 : index
    %c0_0 = arith.constant 0 : index
    %0 = vector.load %arg1[%c0, %c0_0] : memref<8x36xf32, #tpu.memory_space<vmem>>, vector<8x36xf32>
    %c0_1 = arith.constant 0 : index
    %c0_2 = arith.constant 0 : index
    %1 = vector.load %arg2[%c0_1, %c0_2] : memref<36x512xf32, #tpu.memory_space<vmem>>, vector<36x512xf32>
    %cst = arith.constant dense<0.000000e+00> : vector<8x512xf32>
    %2 = tpu.matmul %0, %1, %cst {dimension_numbers = #tpu.dot_dimension_numbers<[1], [0], [0], [1], [0, 0, 1, 1], [], []>, precision = #tpu.contract_precision<fp32>} : vector<8x36xf32>, vector<36x512xf32>, vector<8x512xf32> -> vector<8x512xf32>
    %cst_3 = arith.constant 0.000000e+00 : f32
    %3 = vector.broadcast %cst_3 : f32 to vector<8x512xf32>
    %4 = arith.maximumf %2, %3 : vector<8x512xf32>
    %c0_4 = arith.constant 0 : index
    %c0_5 = arith.constant 0 : index
    %5 = vector.load %arg3[%c0_4, %c0_5] : memref<8x512xf32, #tpu.memory_space<vmem>>, vector<8x512xf32>
    tpu.vector_store %arg3[%c0_4, %c0_5], %4 {strides = array<i32>} : memref<8x512xf32, #tpu.memory_space<vmem>>, vector<8x512xf32>,
    return
  }
  func.func @transform_0(%arg0: i32) -> (i32, i32) {
    %c0_i32 = arith.constant 0 : i32
    %c0_i32_0 = arith.constant 0 : i32
    %c0_i32_1 = arith.constant 0 : i32
    return %c0_i32, %c0_i32_0 : i32, i32
  }
  func.func @transform_1(%arg0: i32) -> (i32, i32) {
    %c0_i32 = arith.constant 0 : i32
    %c0_i32_0 = arith.constant 0 : i32
    return %c0_i32, %arg0 : i32, i32
  }
  func.func @transform_2(%arg0: i32) -> (i32, i32) {
    %c0_i32 = arith.constant 0 : i32
    %c0_i32_0 = arith.constant 0 : i32
    return %c0_i32, %arg0 : i32, i32
  }
}

module attributes {stable_mosaic.version = 11 : i64} {
  func.func @conv_relu_kernel(%arg0: i32, %arg1: memref<8x36xf32, #tpu.memory_space<vmem>>, %arg2: memref<36x512xf32, #tpu.memory_space<vmem>>, %arg3: memref<8x512xf32, #tpu.memory_space<vmem>>) attributes {dimension_semantics = [#tpu.dimension_semantics<parallel>], iteration_bounds = array<i64: 1>, scalar_prefetch = 0 : i64, scratch_operands = 0 : i64, tpu.core_type = #tpu.core_type<tc>, window_params = [{pipeline_mode = #tpu.pipeline_mode<synchronous>, transform_indices = @transform_0, window_bounds = array<i64: 8, 36>}, {transform_indices = @transform_1, window_bounds = array<i64: 36, 512>}, {transform_indices = @transform_2, window_bounds = array<i64: 8, 512>}]} {
    %c0 = arith.constant 0 : index
    %c0_0 = arith.constant 0 : index
    %0 = vector.load %arg1[%c0, %c0_0] : memref<8x36xf32, #tpu.memory_space<vmem>>, vector<8x36xf32>
    %c0_1 = arith.constant 0 : index
    %c0_2 = arith.constant 0 : index
    %1 = vector.load %arg2[%c0_1, %c0_2] : memref<36x512xf32, #tpu.memory_space<vmem>>, vector<36x512xf32>
    %cst = arith.constant dense<0.000000e+00> : vector<8x512xf32>
    %2 = tpu.matmul %0, %1, %cst {dimension_numbers = #tpu.dot_dimension_numbers<[1], [0], [0], [1], [0, 0, 1, 1], [], []>, precision = #tpu.contract_precision<fp32>} : vector<8x36xf32>, vector<36x512xf32>, vector<8x512xf32> -> vector<8x512xf32>
    %cst_3 = arith.constant 0.000000e+00 : f32
    %3 = vector.broadcast %cst_3 : f32 to vector<8x512xf32>
    %4 = arith.maximumf %2, %3 : vector<8x512xf32>
    %c0_4 = arith.constant 0 : index
    %c0_5 = arith.constant 0 : index
    %5 = vector.load %arg3[%c0_4, %c0_5] : memref<8x512xf32, #tpu.memory_space<vmem>>, vector<8x512xf32>
    tpu.vector_store %arg3[%c0_4, %c0_5], %4 {strides = array<i32>} : memref<8x512xf32, #tpu.memory_space<vmem>>, vector<8x512xf32>,
    return
  }
  func.func @transform_0(%arg0: i32) -> (i32, i32) {
    %c0_i32 = arith.constant 0 : i32
    %c0_i32_0 = arith.constant 0 : i32
    %c0_i32_1 = arith.constant 0 : i32
    return %c0_i32, %c0_i32_0 : i32, i32
  }
  func.func @transform_1(%arg0: i32) -> (i32, i32) {
    %c0_i32 = arith.constant 0 : i32
    %c0_i32_0 = arith.constant 0 : i32
    return %c0_i32, %arg0 : i32, i32
  }
  func.func @transform_2(%arg0: i32) -> (i32, i32) {
    %c0_i32 = arith.constant 0 : i32
    %c0_i32_0 = arith.constant 0 : i32
    return %c0_i32, %arg0 : i32, i32
  }
}

</mosaic_0001>

<bundles_post_ra>
// kernel: tpu_custom_call.1
= control target key start
LH: loop header
LB: loop body
LE: loop exit
PB: predicated region body
PF: predicated region fallthrough
CT: control target
= control target key end

     0   :  { %7 = vsyncpa [#allocation3], 0  ;;  %s1785_s0 = inlined_call_operand.hbm [shape: f32[8,36], index: 0, kind: input, shape index: {}]   ;;  %s1786_s1 = inlined_call_operand.hbm [shape: f32[36,512], index: 1, kind: input, shape index: {}]   ;;  %s1787_s2 = inlined_call_operand.hbm [shape: f32[8,512], index: 2, kind: output, shape index: {}]  }
   0x1   :  { %8 = vsyncpa [#allocation6], 0 }
   0x2   :  { %9 = vsyncpa [#allocation4], 0  ;;  %s1432_s9 = smov [#allocation2]   ;;  %s1433_s11 = smov [#allocation5]  }
   0x3   :  { %s16_s10 = sshll.u32 %s1432_s9, 4  ;;  %s25_s12 = sshll.u32 %s1433_s11, 4  ;;  %s17_s10 = int_to_ptr.vmem [resolvable:$true] %s16_s10  ;;  %s1453_s12 = int_to_ptr.vmem [resolvable:$true] %s25_s12 }
   0x4   :  { %s1360_s15 = scalar_lea.hbm %s1785_s0, 128 }
   0x5   :  { %p1361_p0 = scmp.ne.s32.totalorder %s1785_s0, %s1360_s15  ;;  %p1364_p1 = scmp.lt.u32.totalorder %s1360_s15, %s1785_s0 }
   0x7   :  { %p1366_p2 = pnand %p1364_p1, %p1361_p0 }
   0x9   :  { %1369 = shalt.err (!%p1366_p2)
}
   0xa   :  { %s1370_s20 = scalar_lea.vmem %s17_s10, 128  ;;  %p1375_p4 = scmp.lt.s32.totalorder %s17_s10, %s17_s10 }
   0xb   :  { %p1371_p3 = scmp.ne.s32.totalorder %s17_s10, %s1370_s20  ;;  %p1376_p5 = scmp.lt.s32.totalorder %s1370_s20, %s1370_s20 }
   0xd   :  { %p1377_p6 = por %p1376_p5, %p1375_p4 }
   0xf   :  { %p1378_p7 = pnand %p1377_p6, %p1371_p3 }
  0x11   :  { %1381 = shalt.err (!%p1378_p7)
}
  0x12   :  { %19 = dma.hbm_to_vmem [thread:$0]  %s1785_s0, 128, %s17_s10, [#allocation3]  }
  0x13   :  { %s1382_s25 = scalar_lea.hbm %s1786_s1, 2560 }
  0x14   :  { %p1383_p8 = scmp.ne.s32.totalorder %s1786_s1, %s1382_s25  ;;  %p1386_p9 = scmp.lt.u32.totalorder %s1382_s25, %s1786_s1 }
  0x16   :  { %p1388_p10 = pnand %p1386_p9, %p1383_p8 }
  0x18   :  { %1391 = shalt.err (!%p1388_p10)
}
  0x19   :  { %s1392_s30 = scalar_lea.vmem %s1453_s12, 2560  ;;  %p1397_p12 = scmp.lt.s32.totalorder %s1453_s12, %s1453_s12 }
  0x1a   :  { %p1393_p11 = scmp.ne.s32.totalorder %s1453_s12, %s1392_s30  ;;  %p1398_p13 = scmp.lt.s32.totalorder %s1392_s30, %s1392_s30 }
  0x1c   :  { %p1399_p0 = por %p1398_p13, %p1397_p12 }
  0x1e   :  { %p1400_p1 = pnand %p1399_p0, %p1393_p11 }
  0x20   :  { %1403 = shalt.err (!%p1400_p1)
}
  0x21   :  { %s1434_s0 = smov 512   ;;  %s1435_s3 = smov 32  }
  0x22   :  { %31 = dma.hbm_to_vmem [thread:$0]  %s1786_s1, 2560, %s1453_s12, [#allocation6], %s1434_s0, %s1434_s0, %s1435_s3  }
  0x23   :  { %1426 = dma.done.wait [#allocation3], 128  }
  0x24   :  { %1427 = vsyncadd [#allocation3], 4294967168 }
  0x25   :  { %1428 = dma.done.wait [#allocation6], 2560  }
  0x26   :  { %1429 = vsyncadd [#allocation6], 4294964736  ;;  %v1436_v0 = vmov 0.0   ;;  %v40_v1 = vld [vmem:[#allocation5 + $0x8] sm:$0xff]  ;;  %v42_v3 = vld [vmem:[#allocation5 + $0x18] sm:$0xff]  ;;  %vm63_vm0 = vcmask 1043456  }
  0x27   :  { %150 = vmatprep.mubr.f32.mxu0 %v1436_v0  ;;  %719 = vmatprep.mubr.f32.mxu1 %v1436_v0  ;;  %v44_v2 = vld [vmem:[#allocation5 + $0x28] sm:$0xff]  ;;  %v76_v4 = vand.u32 4294901760, %v40_v1  ;;  %v46_v6 = vld [vmem:[#allocation5 + $0x38] sm:$0xff]  ;;  %v645_v7 = vand.u32 4294901760, %v42_v3  ;;  %v39_v8 = vld [vmem:[#allocation5] sm:$0xff]  ;;  %vm59_vm1 = vcmask 293888  }
  0x28   :  { %v80_v5 = vand.u32 4294901760, %v44_v2  ;;  %v43_v9 = vld [vmem:[#allocation5 + $0x20] sm:$0xff]  ;;  %v649_v10 = vand.u32 4294901760, %v46_v6  ;;  %v78_v11 = vand.u32 4294901760, %v39_v8  ;;  %v41_v13 = vld [vmem:[#allocation5 + $0x10] sm:$0xff]  ;;  %v48_v15 = vld [vmem:[#allocation5 + $0x48] sm:$0xff] }
  0x29   :  { %v82_v12 = vand.u32 4294901760, %v43_v9  ;;  %v45_v14 = vld [vmem:[#allocation5 + $0x30] sm:$0xff]  ;;  %v1488_v17 = vsub.f32 %v40_v1, %v76_v4  ;;  %v1492_v19 = vsub.f32 %v42_v3, %v645_v7  ;;  %v52_v20 = vld [vmem:[#allocation5 + $0x68] sm:$0xff]  ;;  %v50_v21 = vld [vmem:[#allocation5 + $0x58] sm:$0xff]  ;;  %v647_v29 = vand.u32 4294901760, %v41_v13  ;;  %s1437_s1 = smov [#allocation7]  }
  0x2a   :  { %v1486_v16 = vpack.c.bf16 %v80_v5, %v76_v4  ;;  %v1490_v18 = vsub.f32 %v44_v2, %v80_v5  ;;  %v54_v22 = vld [vmem:[#allocation5 + $0x78] sm:$0xff]  ;;  %v1494_v23 = vpack.c.bf16 %v649_v10, %v645_v7  ;;  %v1496_v24 = vsub.f32 %v46_v6, %v649_v10  ;;  %v47_v27 = vld [vmem:[#allocation5 + $0x40] sm:$0xff]  ;;  %v49_v37 = vld [vmem:[#allocation5 + $0x50] sm:$0xff]  ;;  %s1228_s6 = sshll.u32 %s1437_s1, 4  ;;  %s1229_s6 = int_to_ptr.vmem [resolvable:$true] %s1228_s6 }
  0x2b   :  { %v1498_v25 = vpack.c.bf16 %v82_v12, %v78_v11  ;;  %v1500_v26 = vsub.f32 %v39_v8, %v78_v11  ;;  %v1503_v28 = vsub.f32 %v43_v9, %v82_v12  ;;  %v651_v30 = vand.u32 4294901760, %v45_v14  ;;  %v51_v32 = vld [vmem:[#allocation5 + $0x60] sm:$0xff]  ;;  %v53_v38 = vld [vmem:[#allocation5 + $0x70] sm:$0xff]  ;;  %v56_v43 = vld [vmem:[#allocation5 + $0x88] sm:$0xf]  ;;  %s1404_s7 = scalar_lea.vmem %s1229_s6, 512  ;;  %p1409_p3 = scmp.lt.s32.totalorder %s1229_s6, %s1229_s6 }
  0x2c   :  { %1239 = vmatprep.subr.bf16.mxu0 %v1486_v16  ;;  %v84_v31 = vand.u32 4294901760, %v48_v15  ;;  %1287 = vmatprep.subr.bf16.mxu1 %v1494_v23  ;;  %v88_v33 = vand.u32 4294901760, %v52_v20  ;;  %v653_v34 = vand.u32 4294901760, %v50_v21  ;;  %v657_v35 = vand.u32 4294901760, %v54_v22  ;;  %v58_v44 = vld [vmem:[#allocation5 + $0x98] sm:$0xf]  ;;  %p1405_p2 = scmp.ne.s32.totalorder %s1229_s6, %s1404_s7  ;;  %p1410_p4 = scmp.lt.s32.totalorder %s1404_s7, %s1404_s7 }
  0x2d   :  { %1241 = vmatpush1.bf16.msra.mxu0 %v1498_v25  ;;  %v86_v36 = vand.u32 4294901760, %v47_v27  ;;  %v1507_v39 = vpack.c.bf16 %v651_v30, %v647_v29  ;;  %v1509_v40 = vsub.f32 %v41_v13, %v647_v29  ;;  %v1511_v41 = vsub.f32 %v45_v14, %v651_v30  ;;  %v55_v45 = vld [vmem:[#allocation5 + $0x80] sm:$0xf]  ;;  %v57_v58 = vld [vmem:[#allocation5 + $0x90] sm:$0xf]  ;;  %v38_v63 = vld [vmem:[#allocation2] sm:$0xff] }
  0x2e   :  { %v1513_v42 = vsub.f32 %v48_v15, %v84_v31  ;;  %v1515_v46 = vpack.c.bf16 %v88_v33, %v84_v31  ;;  %v1517_v47 = vsub.f32 %v52_v20, %v88_v33  ;;  %v1519_v48 = vpack.c.bf16 %v657_v35, %v653_v34  ;;  %p1411_p5 = por %p1410_p4, %p1409_p3 }
  0x2f   :  { %v1521_v49 = vsub.f32 %v50_v21, %v653_v34  ;;  %1289 = vmatpush1.bf16.msra.mxu1 %v1507_v39  ;;  %v1524_v50 = vsub.f32 %v54_v22, %v657_v35  ;;  %v90_v51 = vand.u32 4294901760, %v51_v32  ;;  %v1526_v52 = vsub.f32 %v47_v27, %v86_v36 }
  0x30   :  { %v655_v53 = vand.u32 4294901760, %v49_v37  ;;  %1243 = vmatprep.subr.bf16.mxu0 %v1515_v46  ;;  %1291 = vmatprep.subr.bf16.mxu1 %v1519_v48  ;;  %v659_v54 = vand.u32 4294901760, %v53_v38  ;;  %v1531_v55 = vsel %vm63_vm0, %v56_v43, 0  ;;  %v1534_v56 = vsel %vm63_vm0, %v58_v44, 0  ;;  %p1412_p6 = pnand %p1411_p5, %p1405_p2 }
  0x31   :  { %v65_v57 = vsel %vm63_vm0, %v55_v45, 0  ;;  %v1537_v59 = vpack.c.bf16 %v90_v51, %v86_v36  ;;  %v1539_v60 = vsub.f32 %v51_v32, %v90_v51  ;;  %v1544_v62 = vand.u32 4294901760, %v1531_v55 }
  0x32   :  { %v1541_v61 = vsub.f32 %v49_v37, %v655_v53  ;;  %v1546_v1 = vpack.c.bf16 %v659_v54, %v655_v53  ;;  %v1548_v2 = vsub.f32 %v53_v38, %v659_v54  ;;  %v1551_v3 = vand.u32 4294901760, %v1534_v56 }
  0x33   :  { %v1553_v4 = vand.u32 4294901760, %v65_v57  ;;  %1245 = vmatpush1.bf16.msra.mxu0 %v1537_v59  ;;  %v71_v5 = vsel %vm63_vm0, %v57_v58, 0  ;;  %v164_v6 = vand.u32 4294901760, %v1488_v17  ;;  %v176_v7 = vand.u32 4294901760, %v1490_v18 }
  0x34   :  { %v733_v8 = vand.u32 4294901760, %v1492_v19  ;;  %1293 = vmatpush1.bf16.msra.mxu1 %v1546_v1  ;;  %93 = vmatprep.subr.mxu0 %v1544_v62  ;;  %v1565_v10 = vand.u32 4294901760, %v71_v5  ;;  %v745_v11 = vand.u32 4294901760, %v1496_v24  ;;  %v61_v12 = vsel %vm59_vm1, %v38_v63, 0 }
  0x35   :  { %v1563_v9 = vsub.f32 %v65_v57, %v1553_v4  ;;  %662 = vmatprep.subr.mxu1 %v1551_v3  ;;  %v165_v13 = vsub.f32 %v1488_v17, %v164_v6  ;;  %v177_v14 = vsub.f32 %v1490_v18, %v176_v7  ;;  %v1579_v20 = vand.u32 4294901760, %v61_v12 }
  0x36   :  { %v734_v15 = vsub.f32 %v1492_v19, %v733_v8  ;;  %v1582_v21 = vsub.f32 %v71_v5, %v1565_v10  ;;  %v746_v22 = vsub.f32 %v1496_v24, %v745_v11  ;;  %v170_v27 = vand.u32 4294901760, %v1500_v26 }
  0x37   :  { %v182_v29 = vand.u32 4294901760, %v1503_v28  ;;  %95 = vmatpush1.msra.mxu0 %v1553_v4  ;;  %v166_v30 = vand.u32 4294901760, %v165_v13  ;;  %v178_v31 = vand.u32 4294901760, %v177_v14  ;;  %v1591_v33 = vsub.f32 %v61_v12, %v1579_v20 }
  0x38   :  { %v735_v32 = vand.u32 4294901760, %v734_v15  ;;  %664 = vmatpush1.msra.mxu1 %v1565_v10  ;;  %v747_v34 = vand.u32 4294901760, %v746_v22  ;;  %v171_v35 = vsub.f32 %v1500_v26, %v170_v27  ;;  %v739_v37 = vand.u32 4294901760, %v1509_v40 }
  0x39   :  { %v183_v36 = vsub.f32 %v1503_v28, %v182_v29  ;;  %v1246_v38 = vpack.c.bf16 %v178_v31, %v166_v30  ;;  %v1602_v43 = vand.u32 4294901760, %v1591_v33  ;;  %v751_v44 = vand.u32 4294901760, %v1511_v41 }
  0x3a   :  { %v188_v45 = vand.u32 4294901760, %v1513_v42  ;;  %v1294_v51 = vpack.c.bf16 %v747_v34, %v735_v32  ;;  %v172_v53 = vand.u32 4294901760, %v171_v35  ;;  %v740_v57 = vsub.f32 %v1509_v40, %v739_v37 }
  0x3b   :  { %v184_v54 = vand.u32 4294901760, %v183_v36  ;;  %1247 = vmatprep.subr.bf16.mxu0 %v1246_v38  ;;  %v154_v58 = vsub.f32 %v1591_v33, %v1602_v43  ;;  %v752_v63 = vsub.f32 %v1511_v41, %v751_v44  ;;  %v200_v12 = vand.u32 4294901760, %v1517_v47 }
  0x3c   :  { %v189_v5 = vsub.f32 %v1513_v42, %v188_v45  ;;  %1295 = vmatprep.subr.bf16.mxu1 %v1294_v51  ;;  %v741_v14 = vand.u32 4294901760, %v740_v57  ;;  %v1788_v15 = vand.u32 4294901760, %v1521_v49  ;;  %v1789_v22 = vand.u32 4294901760, %v1524_v50 }
  0x3d   :  { %v1248_v13 = vpack.c.bf16 %v184_v54, %v172_v53  ;;  %v155_v30 = vand.u32 4294901760, %v154_v58  ;;  %v753_v31 = vand.u32 4294901760, %v752_v63  ;;  %v201_v34 = vsub.f32 %v1517_v47, %v200_v12 }
  0x3e   :  { %v190_v32 = vand.u32 4294901760, %v189_v5  ;;  %v758_v35 = vsub.f32 %v1521_v49, %v1788_v15  ;;  %v770_v36 = vsub.f32 %v1524_v50, %v1789_v22  ;;  %v194_v38 = vand.u32 4294901760, %v1526_v52 }
  0x3f   :  { %v1790_v51 = vand.u32 4294901760, %v1539_v60  ;;  %156 = vmatmul.mubr.f32.vlgmr.msra.gmra.mrb[0].mxu0 %v155_v30  ;;  %725 = vmatmul.mubr.f32.vlgmr.msra.gmra.mrb[0].mxu1 %v155_v30  ;;  %v1296_v53 = vpack.c.bf16 %v753_v31, %v741_v14  ;;  %v202_v54 = vand.u32 4294901760, %v201_v34  ;;  %v1792_v57 = vand.u32 4294901760, %v1541_v61 }
  0x40   :  { %v1791_v58 = vand.u32 4294901760, %v1548_v2  ;;  %1249 = vmatpush1.bf16.msra.mxu0 %v1248_v13  ;;  %v759_v63 = vand.u32 4294901760, %v758_v35  ;;  %v771_v5 = vand.u32 4294901760, %v770_v36  ;;  %v195_v15 = vsub.f32 %v1526_v52, %v194_v38  ;;  %276 = vmatprep.mubr.f32.mxu0 %v1436_v0 }
  0x41   :  { %v207_v22 = vsub.f32 %v1539_v60, %v1790_v51  ;;  %1297 = vmatpush1.bf16.msra.mxu1 %v1296_v53  ;;  %v1250_v14 = vpack.c.bf16 %v202_v54, %v190_v32  ;;  %v764_v30 = vsub.f32 %v1541_v61, %v1792_v57  ;;  %v1648_v31 = vsub.f32 %v1531_v55, %v1544_v62 }
  0x42   :  { %v776_v13 = vsub.f32 %v1548_v2, %v1791_v58  ;;  %v1298_v34 = vpack.c.bf16 %v771_v5, %v759_v63  ;;  %v196_v35 = vand.u32 4294901760, %v195_v15  ;;  %v1652_v51 = vsub.f32 %v1534_v56, %v1551_v3  ;;  %845 = vmatprep.mubr.f32.mxu1 %v1436_v0 }
  0x43   :  { %v208_v36 = vand.u32 4294901760, %v207_v22  ;;  %1251 = vmatprep.subr.bf16.mxu0 %v1250_v14  ;;  %v765_v32 = vand.u32 4294901760, %v764_v30  ;;  %v212_v54 = vand.u32 4294901760, %v1648_v31  ;;  %v218_v58 = vand.u32 4294901760, %v1563_v9 }
  0x44   :  { %v777_v53 = vand.u32 4294901760, %v776_v13  ;;  %1299 = vmatprep.subr.bf16.mxu1 %v1298_v34  ;;  %v781_v55 = vand.u32 4294901760, %v1652_v51  ;;  %v787_v15 = vand.u32 4294901760, %v1582_v21  ;;  %v1254_v34 = vpack.c.bf16 %v1490_v18, %v1488_v17 }
  0x45   :  { %v1252_v57 = vpack.c.bf16 %v208_v36, %v196_v35  ;;  %v213_v56 = vsub.f32 %v1648_v31, %v212_v54  ;;  %v219_v63 = vsub.f32 %v1563_v9, %v218_v58  ;;  %v1320_v17 = vpack.c.bf16 %v751_v44, %v739_v37 }
  0x46   :  { %v1300_v22 = vpack.c.bf16 %v777_v53, %v765_v32  ;;  %v782_v5 = vsub.f32 %v1652_v51, %v781_v55  ;;  %v788_v14 = vsub.f32 %v1582_v21, %v787_v15  ;;  %v1302_v32 = vpack.c.bf16 %v1496_v24, %v1492_v19 }
  0x47   :  { %1253 = vmatpush1.bf16.msra.mxu0 %v1252_v57  ;;  %v214_v30 = vand.u32 4294901760, %v213_v56  ;;  %v220_v13 = vand.u32 4294901760, %v219_v63  ;;  %v1256_v57 = vpack.c.bf16 %v1503_v28, %v1500_v26  ;;  %v1304_v53 = vpack.c.bf16 %v1511_v41, %v1509_v40 }
  0x48   :  { %1301 = vmatpush1.bf16.msra.mxu1 %v1300_v22  ;;  %v783_v35 = vand.u32 4294901760, %v782_v5  ;;  %v789_v36 = vand.u32 4294901760, %v788_v14  ;;  %v1258_v22 = vpack.c.bf16 %v1517_v47, %v1513_v42  ;;  %v1306_v56 = vpack.c.bf16 %v1524_v50, %v1521_v49 }
  0x49   :  { %215 = vmatprep.subr.mxu0 %v214_v30  ;;  %v1260_v63 = vpack.c.bf16 %v1539_v60, %v1526_v52  ;;  %v1308_v5 = vpack.c.bf16 %v1548_v2, %v1541_v61  ;;  %v1318_v14 = vpack.c.bf16 %v745_v11, %v733_v8  ;;  %v1272_v30 = vpack.c.bf16 %v182_v29, %v170_v27 }
  0x4a   :  { %784 = vmatprep.subr.mxu1 %v783_v35  ;;  %v1274_v18 = vpack.c.bf16 %v200_v12, %v188_v45  ;;  %v1793_v19 = vand.u32 4294901760, %v1521_v49  ;;  %v1794_v24 = vand.u32 4294901760, %v1524_v50  ;;  %v1795_v28 = vand.u32 4294901760, %v1539_v60 }
  0x4b   :  { %221 = vmatpush1.msra.mxu0 %v220_v13  ;;  %v1796_v41 = vand.u32 4294901760, %v1541_v61  ;;  %v1797_v42 = vand.u32 4294901760, %v1548_v2 }
  0x4c   :  { %790 = vmatpush1.msra.mxu1 %v789_v36  ;;  %1255 = vmatprep.subr.bf16.mxu0 %v1254_v34  ;;  %v1322_v26 = vpack.c.bf16 %v1794_v24, %v1793_v19  ;;  %v1276_v40 = vpack.c.bf16 %v1795_v28, %v194_v38 }
  0x4d   :  { %1303 = vmatprep.subr.bf16.mxu1 %v1302_v32  ;;  %278 = vmatmul.mubr.f32.vlgmr.msra.gmra.mrb[0].mxu0 %v1579_v20  ;;  %v1324_v47 = vpack.c.bf16 %v1797_v42, %v1796_v41 }
  0x4e   :  { %1257 = vmatpush1.bf16.msra.mxu0 %v1256_v57  ;;  %847 = vmatmul.mubr.f32.vlgmr.msra.gmra.mrb[0].mxu1 %v1579_v20 }
  0x4f   :  { %1305 = vmatpush1.bf16.msra.mxu1 %v1304_v53  ;;  %1259 = vmatprep.subr.bf16.mxu0 %v1258_v22 }
  0x50   :  { %1307 = vmatprep.subr.bf16.mxu1 %v1306_v56  ;;  %368 = vmatprep.mubr.f32.mxu0 %v1436_v0 }
  0x51   :  { %937 = vmatprep.mubr.f32.mxu1 %v1436_v0 }
  0x52   :  { %1261 = vmatpush1.bf16.msra.mxu0 %v1260_v63 }
  0x53   :  { %1309 = vmatpush1.bf16.msra.mxu1 %v1308_v5  ;;  %310 = vmatprep.subr.mxu0 %v1648_v31 }
  0x54   :  { %879 = vmatprep.subr.mxu1 %v1652_v51 }
  0x56   :  { %313 = vmatpush1.msra.mxu0 %v1563_v9 }
  0x57   :  { %882 = vmatpush1.msra.mxu1 %v1582_v21  ;;  %1263 = vmatprep.subr.bf16.mxu0 %v1486_v16 }
  0x58   :  { %1311 = vmatprep.subr.bf16.mxu1 %v1494_v23  ;;  %371 = vmatmul.mubr.f32.vlgmr.msra.gmra.mrb[0].mxu0 %v1591_v33 }
  0x59   :  { %1265 = vmatpush1.bf16.msra.mxu0 %v1498_v25  ;;  %940 = vmatmul.mubr.f32.vlgmr.msra.gmra.mrb[0].mxu1 %v1591_v33  ;;  %v1270_v33 = vpack.c.bf16 %v176_v7, %v164_v6 }
  0x5a   :  { %1313 = vmatpush1.bf16.msra.mxu1 %v1507_v39  ;;  %1267 = vmatprep.subr.bf16.mxu0 %v1515_v46 }
  0x5b   :  { %1315 = vmatprep.subr.bf16.mxu1 %v1519_v48  ;;  %451 = vmatprep.mubr.f32.mxu0 %v1436_v0 }
  0x5c   :  { %1020 = vmatprep.mubr.f32.mxu1 %v1436_v0 }
  0x5d   :  { %1269 = vmatpush1.bf16.msra.mxu0 %v1537_v59 }
  0x5e   :  { %1317 = vmatpush1.bf16.msra.mxu1 %v1546_v1  ;;  %394 = vmatprep.subr.mxu0 %v1544_v62 }
  0x5f   :  { %963 = vmatprep.subr.mxu1 %v1551_v3 }
  0x61   :  { %396 = vmatpush1.msra.mxu0 %v1553_v4 }
  0x62   :  { %965 = vmatpush1.msra.mxu1 %v1565_v10  ;;  %1271 = vmatprep.subr.bf16.mxu0 %v1270_v33 }
  0x63   :  { %1319 = vmatprep.subr.bf16.mxu1 %v1318_v14  ;;  %455 = vmatmul.mubr.f32.vlgmr.msra.gmra.mrb[0].mxu0 %v1602_v43 }
  0x64   :  { %1273 = vmatpush1.bf16.msra.mxu0 %v1272_v30  ;;  %1024 = vmatmul.mubr.f32.vlgmr.msra.gmra.mrb[0].mxu1 %v1602_v43 }
  0x65   :  { %1321 = vmatpush1.bf16.msra.mxu1 %v1320_v17  ;;  %1275 = vmatprep.subr.bf16.mxu0 %v1274_v18 }
  0x66   :  { %1323 = vmatprep.subr.bf16.mxu1 %v1322_v26  ;;  %555 = vmatprep.mubr.f32.mxu0 %v1436_v0 }
  0x67   :  { %1124 = vmatprep.mubr.f32.mxu1 %v1436_v0 }
  0x68   :  { %1277 = vmatpush1.bf16.msra.mxu0 %v1276_v40 }
  0x69   :  { %1325 = vmatpush1.bf16.msra.mxu1 %v1324_v47  ;;  %496 = vmatprep.subr.mxu0 %v212_v54 }
  0x6a   :  { %1065 = vmatprep.subr.mxu1 %v781_v55 }
  0x6c   :  { %500 = vmatpush1.msra.mxu0 %v218_v58 }
  0x6d   :  { %1069 = vmatpush1.msra.mxu1 %v787_v15  ;;  %1279 = vmatprep.subr.bf16.mxu0 %v1486_v16 }
  0x6e   :  { %1327 = vmatprep.subr.bf16.mxu1 %v1494_v23  ;;  %557 = vmatmul.mubr.f32.vlgmr.msra.gmra.mrb[0].mxu0 %v1579_v20 }
  0x6f   :  { %1281 = vmatpush1.bf16.msra.mxu0 %v1498_v25  ;;  %1126 = vmatmul.mubr.f32.vlgmr.msra.gmra.mrb[0].mxu1 %v1579_v20 }
  0x70   :  { %1329 = vmatpush1.bf16.msra.mxu1 %v1507_v39  ;;  %1283 = vmatprep.subr.bf16.mxu0 %v1515_v46 }
  0x71   :  { %1331 = vmatprep.subr.bf16.mxu1 %v1519_v48  ;;  %637 = vmatprep.mubr.f32.mxu0 %v1436_v0 }
  0x72   :  { %1206 = vmatprep.mubr.f32.mxu1 %v1436_v0 }
  0x73   :  { %1285 = vmatpush1.bf16.msra.mxu0 %v1537_v59 }
  0x74   :  { %1333 = vmatpush1.bf16.msra.mxu1 %v1546_v1  ;;  %580 = vmatprep.subr.mxu0 %v1544_v62 }
  0x75   :  { %1149 = vmatprep.subr.mxu1 %v1551_v3 }
  0x77   :  { %582 = vmatpush1.msra.mxu0 %v1553_v4 }
  0x78   :  { %1151 = vmatpush1.msra.mxu1 %v1565_v10  ;;  %639 = vmatmul.mubr.f32.vlgmr.msra.gmra.mrb[0].mxu0 %v1579_v20 }
  0x79   :  { %1208 = vmatmul.mubr.f32.vlgmr.msra.gmra.mrb[0].mxu1 %v1579_v20 }
 0x14b   :  { %v640_v16 = vpop.f32.mrb[0].mxu0 }
 0x14c   :  { %v1214_v0 = vmax.f32 %v640_v16, 0.0  ;;  %v1209_v23 = vpop.f32.mrb[0].mxu1  ;;  %v642_v25 = vpop.f32.mrb[1].mxu0 }
 0x14d   :  { %v1216_v39 = vmax.f32 %v1209_v23, 0.0  ;;  %v1215_v46 = vmax.f32 %v642_v25, 0.0  ;;  %v1211_v48 = vpop.f32.mrb[1].mxu1 }
 0x14e   :  { %1218 = vst [vmem:[#allocation7] sm:$0xff] %v1214_v0  ;;  %v1217_v49 = vmax.f32 %v1211_v48, 0.0 }
 0x14f   :  { %1220 = vst [vmem:[#allocation7 + $0x10] sm:$0xff] %v1216_v39  ;;  %1219 = vst [vmem:[#allocation7 + $0x8] sm:$0xff] %v1215_v46 }
 0x150   :  { %1221 = vst [vmem:[#allocation7 + $0x18] sm:$0xff] %v1217_v49 }
 0x151   :  { %1415 = shalt.err (!%p1412_p6)
}
 0x152   :  { %s1416_s10 = scalar_lea.hbm %s1787_s2, 512 }
 0x153   :  { %p1417_p7 = scmp.ne.s32.totalorder %s1787_s2, %s1416_s10  ;;  %p1420_p8 = scmp.lt.u32.totalorder %s1416_s10, %s1787_s2 }
 0x155   :  { %p1422_p9 = pnand %p1420_p8, %p1417_p7 }
 0x157   :  { %1425 = shalt.err (!%p1422_p9)
}
 0x158   :  { %1231 = dma.vmem_to_hbm [thread:$0]  %s1229_s6, 512, %s1787_s2, [#allocation4]  }
 0x159   :  { %1430 = dma.done.wait [#allocation4], 512  }
 0x15a   :  { %1431 = vsyncadd [#allocation4], 4294966784 }
 0x15b   :  { %1235 = vsyncpa [#allocation3], 1 }
 0x15c   :  { %1236 = vsyncpa [#allocation6], 1 }
 0x15d   :  { %1237 = vsyncpa [#allocation4], 1 }

// kernel: tpu_custom_call.1
= control target key start
LH: loop header
LB: loop body
LE: loop exit
PB: predicated region body
PF: predicated region fallthrough
CT: control target
= control target key end

     0   :  { %7 = vsyncpa [#allocation3], 0  ;;  %s1785_s0 = inlined_call_operand.hbm [shape: f32[8,36], index: 0, kind: input, shape index: {}]   ;;  %s1786_s1 = inlined_call_operand.hbm [shape: f32[36,512], index: 1, kind: input, shape index: {}]   ;;  %s1787_s2 = inlined_call_operand.hbm [shape: f32[8,512], index: 2, kind: output, shape index: {}]  }
   0x1   :  { %8 = vsyncpa [#allocation6], 0 }
   0x2   :  { %9 = vsyncpa [#allocation4], 0  ;;  %s1432_s9 = smov [#allocation2]   ;;  %s1433_s11 = smov [#allocation5]  }
   0x3   :  { %s16_s10 = sshll.u32 %s1432_s9, 4  ;;  %s25_s12 = sshll.u32 %s1433_s11, 4  ;;  %s17_s10 = int_to_ptr.vmem [resolvable:$true] %s16_s10  ;;  %s1453_s12 = int_to_ptr.vmem [resolvable:$true] %s25_s12 }
   0x4   :  { %s1360_s15 = scalar_lea.hbm %s1785_s0, 128 }
   0x5   :  { %p1361_p0 = scmp.ne.s32.totalorder %s1785_s0, %s1360_s15  ;;  %p1364_p1 = scmp.lt.u32.totalorder %s1360_s15, %s1785_s0 }
   0x7   :  { %p1366_p2 = pnand %p1364_p1, %p1361_p0 }
   0x9   :  { %1369 = shalt.err (!%p1366_p2)
}
   0xa   :  { %s1370_s20 = scalar_lea.vmem %s17_s10, 128  ;;  %p1375_p4 = scmp.lt.s32.totalorder %s17_s10, %s17_s10 }
   0xb   :  { %p1371_p3 = scmp.ne.s32.totalorder %s17_s10, %s1370_s20  ;;  %p1376_p5 = scmp.lt.s32.totalorder %s1370_s20, %s1370_s20 }
   0xd   :  { %p1377_p6 = por %p1376_p5, %p1375_p4 }
   0xf   :  { %p1378_p7 = pnand %p1377_p6, %p1371_p3 }
  0x11   :  { %1381 = shalt.err (!%p1378_p7)
}
  0x12   :  { %19 = dma.hbm_to_vmem [thread:$0]  %s1785_s0, 128, %s17_s10, [#allocation3]  }
  0x13   :  { %s1382_s25 = scalar_lea.hbm %s1786_s1, 2560 }
  0x14   :  { %p1383_p8 = scmp.ne.s32.totalorder %s1786_s1, %s1382_s25  ;;  %p1386_p9 = scmp.lt.u32.totalorder %s1382_s25, %s1786_s1 }
  0x16   :  { %p1388_p10 = pnand %p1386_p9, %p1383_p8 }
  0x18   :  { %1391 = shalt.err (!%p1388_p10)
}
  0x19   :  { %s1392_s30 = scalar_lea.vmem %s1453_s12, 2560  ;;  %p1397_p12 = scmp.lt.s32.totalorder %s1453_s12, %s1453_s12 }
  0x1a   :  { %p1393_p11 = scmp.ne.s32.totalorder %s1453_s12, %s1392_s30  ;;  %p1398_p13 = scmp.lt.s32.totalorder %s1392_s30, %s1392_s30 }
  0x1c   :  { %p1399_p0 = por %p1398_p13, %p1397_p12 }
  0x1e   :  { %p1400_p1 = pnand %p1399_p0, %p1393_p11 }
  0x20   :  { %1403 = shalt.err (!%p1400_p1)
}
  0x21   :  { %s1434_s0 = smov 512   ;;  %s1435_s3 = smov 32  }
  0x22   :  { %31 = dma.hbm_to_vmem [thread:$0]  %s1786_s1, 2560, %s1453_s12, [#allocation6], %s1434_s0, %s1434_s0, %s1435_s3  }
  0x23   :  { %1426 = dma.done.wait [#allocation3], 128  }
  0x24   :  { %1427 = vsyncadd [#allocation3], 4294967168 }
  0x25   :  { %1428 = dma.done.wait [#allocation6], 2560  }
  0x26   :  { %1429 = vsyncadd [#allocation6], 4294964736  ;;  %v1436_v0 = vmov 0.0   ;;  %v40_v1 = vld [vmem:[#allocation5 + $0x8] sm:$0xff]  ;;  %v42_v3 = vld [vmem:[#allocation5 + $0x18] sm:$0xff]  ;;  %vm63_vm0 = vcmask 1043456  }
  0x27   :  { %150 = vmatprep.mubr.f32.mxu0 %v1436_v0  ;;  %719 = vmatprep.mubr.f32.mxu1 %v1436_v0  ;;  %v44_v2 = vld [vmem:[#allocation5 + $0x28] sm:$0xff]  ;;  %v76_v4 = vand.u32 4294901760, %v40_v1  ;;  %v46_v6 = vld [vmem:[#allocation5 + $0x38] sm:$0xff]  ;;  %v645_v7 = vand.u32 4294901760, %v42_v3  ;;  %v39_v8 = vld [vmem:[#allocation5] sm:$0xff]  ;;  %vm59_vm1 = vcmask 293888  }
  0x28   :  { %v80_v5 = vand.u32 4294901760, %v44_v2  ;;  %v43_v9 = vld [vmem:[#allocation5 + $0x20] sm:$0xff]  ;;  %v649_v10 = vand.u32 4294901760, %v46_v6  ;;  %v78_v11 = vand.u32 4294901760, %v39_v8  ;;  %v41_v13 = vld [vmem:[#allocation5 + $0x10] sm:$0xff]  ;;  %v48_v15 = vld [vmem:[#allocation5 + $0x48] sm:$0xff] }
  0x29   :  { %v82_v12 = vand.u32 4294901760, %v43_v9  ;;  %v45_v14 = vld [vmem:[#allocation5 + $0x30] sm:$0xff]  ;;  %v1488_v17 = vsub.f32 %v40_v1, %v76_v4  ;;  %v1492_v19 = vsub.f32 %v42_v3, %v645_v7  ;;  %v52_v20 = vld [vmem:[#allocation5 + $0x68] sm:$0xff]  ;;  %v50_v21 = vld [vmem:[#allocation5 + $0x58] sm:$0xff]  ;;  %v647_v29 = vand.u32 4294901760, %v41_v13  ;;  %s1437_s1 = smov [#allocation7]  }
  0x2a   :  { %v1486_v16 = vpack.c.bf16 %v80_v5, %v76_v4  ;;  %v1490_v18 = vsub.f32 %v44_v2, %v80_v5  ;;  %v54_v22 = vld [vmem:[#allocation5 + $0x78] sm:$0xff]  ;;  %v1494_v23 = vpack.c.bf16 %v649_v10, %v645_v7  ;;  %v1496_v24 = vsub.f32 %v46_v6, %v649_v10  ;;  %v47_v27 = vld [vmem:[#allocation5 + $0x40] sm:$0xff]  ;;  %v49_v37 = vld [vmem:[#allocation5 + $0x50] sm:$0xff]  ;;  %s1228_s6 = sshll.u32 %s1437_s1, 4  ;;  %s1229_s6 = int_to_ptr.vmem [resolvable:$true] %s1228_s6 }
  0x2b   :  { %v1498_v25 = vpack.c.bf16 %v82_v12, %v78_v11  ;;  %v1500_v26 = vsub.f32 %v39_v8, %v78_v11  ;;  %v1503_v28 = vsub.f32 %v43_v9, %v82_v12  ;;  %v651_v30 = vand.u32 4294901760, %v45_v14  ;;  %v51_v32 = vld [vmem:[#allocation5 + $0x60] sm:$0xff]  ;;  %v53_v38 = vld [vmem:[#allocation5 + $0x70] sm:$0xff]  ;;  %v56_v43 = vld [vmem:[#allocation5 + $0x88] sm:$0xf]  ;;  %s1404_s7 = scalar_lea.vmem %s1229_s6, 512  ;;  %p1409_p3 = scmp.lt.s32.totalorder %s1229_s6, %s1229_s6 }
  0x2c   :  { %1239 = vmatprep.subr.bf16.mxu0 %v1486_v16  ;;  %v84_v31 = vand.u32 4294901760, %v48_v15  ;;  %1287 = vmatprep.subr.bf16.mxu1 %v1494_v23  ;;  %v88_v33 = vand.u32 4294901760, %v52_v20  ;;  %v653_v34 = vand.u32 4294901760, %v50_v21  ;;  %v657_v35 = vand.u32 4294901760, %v54_v22  ;;  %v58_v44 = vld [vmem:[#allocation5 + $0x98] sm:$0xf]  ;;  %p1405_p2 = scmp.ne.s32.totalorder %s1229_s6, %s1404_s7  ;;  %p1410_p4 = scmp.lt.s32.totalorder %s1404_s7, %s1404_s7 }
  0x2d   :  { %1241 = vmatpush1.bf16.msra.mxu0 %v1498_v25  ;;  %v86_v36 = vand.u32 4294901760, %v47_v27  ;;  %v1507_v39 = vpack.c.bf16 %v651_v30, %v647_v29  ;;  %v1509_v40 = vsub.f32 %v41_v13, %v647_v29  ;;  %v1511_v41 = vsub.f32 %v45_v14, %v651_v30  ;;  %v55_v45 = vld [vmem:[#allocation5 + $0x80] sm:$0xf]  ;;  %v57_v58 = vld [vmem:[#allocation5 + $0x90] sm:$0xf]  ;;  %v38_v63 = vld [vmem:[#allocation2] sm:$0xff] }
  0x2e   :  { %v1513_v42 = vsub.f32 %v48_v15, %v84_v31  ;;  %v1515_v46 = vpack.c.bf16 %v88_v33, %v84_v31  ;;  %v1517_v47 = vsub.f32 %v52_v20, %v88_v33  ;;  %v1519_v48 = vpack.c.bf16 %v657_v35, %v653_v34  ;;  %p1411_p5 = por %p1410_p4, %p1409_p3 }
  0x2f   :  { %v1521_v49 = vsub.f32 %v50_v21, %v653_v34  ;;  %1289 = vmatpush1.bf16.msra.mxu1 %v1507_v39  ;;  %v1524_v50 = vsub.f32 %v54_v22, %v657_v35  ;;  %v90_v51 = vand.u32 4294901760, %v51_v32  ;;  %v1526_v52 = vsub.f32 %v47_v27, %v86_v36 }
  0x30   :  { %v655_v53 = vand.u32 4294901760, %v49_v37  ;;  %1243 = vmatprep.subr.bf16.mxu0 %v1515_v46  ;;  %1291 = vmatprep.subr.bf16.mxu1 %v1519_v48  ;;  %v659_v54 = vand.u32 4294901760, %v53_v38  ;;  %v1531_v55 = vsel %vm63_vm0, %v56_v43, 0  ;;  %v1534_v56 = vsel %vm63_vm0, %v58_v44, 0  ;;  %p1412_p6 = pnand %p1411_p5, %p1405_p2 }
  0x31   :  { %v65_v57 = vsel %vm63_vm0, %v55_v45, 0  ;;  %v1537_v59 = vpack.c.bf16 %v90_v51, %v86_v36  ;;  %v1539_v60 = vsub.f32 %v51_v32, %v90_v51  ;;  %v1544_v62 = vand.u32 4294901760, %v1531_v55 }
  0x32   :  { %v1541_v61 = vsub.f32 %v49_v37, %v655_v53  ;;  %v1546_v1 = vpack.c.bf16 %v659_v54, %v655_v53  ;;  %v1548_v2 = vsub.f32 %v53_v38, %v659_v54  ;;  %v1551_v3 = vand.u32 4294901760, %v1534_v56 }
  0x33   :  { %v1553_v4 = vand.u32 4294901760, %v65_v57  ;;  %1245 = vmatpush1.bf16.msra.mxu0 %v1537_v59  ;;  %v71_v5 = vsel %vm63_vm0, %v57_v58, 0  ;;  %v164_v6 = vand.u32 4294901760, %v1488_v17  ;;  %v176_v7 = vand.u32 4294901760, %v1490_v18 }
  0x34   :  { %v733_v8 = vand.u32 4294901760, %v1492_v19  ;;  %1293 = vmatpush1.bf16.msra.mxu1 %v1546_v1  ;;  %93 = vmatprep.subr.mxu0 %v1544_v62  ;;  %v1565_v10 = vand.u32 4294901760, %v71_v5  ;;  %v745_v11 = vand.u32 4294901760, %v1496_v24  ;;  %v61_v12 = vsel %vm59_vm1, %v38_v63, 0 }
  0x35   :  { %v1563_v9 = vsub.f32 %v65_v57, %v1553_v4  ;;  %662 = vmatprep.subr.mxu1 %v1551_v3  ;;  %v165_v13 = vsub.f32 %v1488_v17, %v164_v6  ;;  %v177_v14 = vsub.f32 %v1490_v18, %v176_v7  ;;  %v1579_v20 = vand.u32 4294901760, %v61_v12 }
  0x36   :  { %v734_v15 = vsub.f32 %v1492_v19, %v733_v8  ;;  %v1582_v21 = vsub.f32 %v71_v5, %v1565_v10  ;;  %v746_v22 = vsub.f32 %v1496_v24, %v745_v11  ;;  %v170_v27 = vand.u32 4294901760, %v1500_v26 }
  0x37   :  { %v182_v29 = vand.u32 4294901760, %v1503_v28  ;;  %95 = vmatpush1.msra.mxu0 %v1553_v4  ;;  %v166_v30 = vand.u32 4294901760, %v165_v13  ;;  %v178_v31 = vand.u32 4294901760, %v177_v14  ;;  %v1591_v33 = vsub.f32 %v61_v12, %v1579_v20 }
  0x38   :  { %v735_v32 = vand.u32 4294901760, %v734_v15  ;;  %664 = vmatpush1.msra.mxu1 %v1565_v10  ;;  %v747_v34 = vand.u32 4294901760, %v746_v22  ;;  %v171_v35 = vsub.f32 %v1500_v26, %v170_v27  ;;  %v739_v37 = vand.u32 4294901760, %v1509_v40 }
  0x39   :  { %v183_v36 = vsub.f32 %v1503_v28, %v182_v29  ;;  %v1246_v38 = vpack.c.bf16 %v178_v31, %v166_v30  ;;  %v1602_v43 = vand.u32 4294901760, %v1591_v33  ;;  %v751_v44 = vand.u32 4294901760, %v1511_v41 }
  0x3a   :  { %v188_v45 = vand.u32 4294901760, %v1513_v42  ;;  %v1294_v51 = vpack.c.bf16 %v747_v34, %v735_v32  ;;  %v172_v53 = vand.u32 4294901760, %v171_v35  ;;  %v740_v57 = vsub.f32 %v1509_v40, %v739_v37 }
  0x3b   :  { %v184_v54 = vand.u32 4294901760, %v183_v36  ;;  %1247 = vmatprep.subr.bf16.mxu0 %v1246_v38  ;;  %v154_v58 = vsub.f32 %v1591_v33, %v1602_v43  ;;  %v752_v63 = vsub.f32 %v1511_v41, %v751_v44  ;;  %v200_v12 = vand.u32 4294901760, %v1517_v47 }
  0x3c   :  { %v189_v5 = vsub.f32 %v1513_v42, %v188_v45  ;;  %1295 = vmatprep.subr.bf16.mxu1 %v1294_v51  ;;  %v741_v14 = vand.u32 4294901760, %v740_v57  ;;  %v1788_v15 = vand.u32 4294901760, %v1521_v49  ;;  %v1789_v22 = vand.u32 4294901760, %v1524_v50 }
  0x3d   :  { %v1248_v13 = vpack.c.bf16 %v184_v54, %v172_v53  ;;  %v155_v30 = vand.u32 4294901760, %v154_v58  ;;  %v753_v31 = vand.u32 4294901760, %v752_v63  ;;  %v201_v34 = vsub.f32 %v1517_v47, %v200_v12 }
  0x3e   :  { %v190_v32 = vand.u32 4294901760, %v189_v5  ;;  %v758_v35 = vsub.f32 %v1521_v49, %v1788_v15  ;;  %v770_v36 = vsub.f32 %v1524_v50, %v1789_v22  ;;  %v194_v38 = vand.u32 4294901760, %v1526_v52 }
  0x3f   :  { %v1790_v51 = vand.u32 4294901760, %v1539_v60  ;;  %156 = vmatmul.mubr.f32.vlgmr.msra.gmra.mrb[0].mxu0 %v155_v30  ;;  %725 = vmatmul.mubr.f32.vlgmr.msra.gmra.mrb[0].mxu1 %v155_v30  ;;  %v1296_v53 = vpack.c.bf16 %v753_v31, %v741_v14  ;;  %v202_v54 = vand.u32 4294901760, %v201_v34  ;;  %v1792_v57 = vand.u32 4294901760, %v1541_v61 }
  0x40   :  { %v1791_v58 = vand.u32 4294901760, %v1548_v2  ;;  %1249 = vmatpush1.bf16.msra.mxu0 %v1248_v13  ;;  %v759_v63 = vand.u32 4294901760, %v758_v35  ;;  %v771_v5 = vand.u32 4294901760, %v770_v36  ;;  %v195_v15 = vsub.f32 %v1526_v52, %v194_v38  ;;  %276 = vmatprep.mubr.f32.mxu0 %v1436_v0 }
  0x41   :  { %v207_v22 = vsub.f32 %v1539_v60, %v1790_v51  ;;  %1297 = vmatpush1.bf16.msra.mxu1 %v1296_v53  ;;  %v1250_v14 = vpack.c.bf16 %v202_v54, %v190_v32  ;;  %v764_v30 = vsub.f32 %v1541_v61, %v1792_v57  ;;  %v1648_v31 = vsub.f32 %v1531_v55, %v1544_v62 }
  0x42   :  { %v776_v13 = vsub.f32 %v1548_v2, %v1791_v58  ;;  %v1298_v34 = vpack.c.bf16 %v771_v5, %v759_v63  ;;  %v196_v35 = vand.u32 4294901760, %v195_v15  ;;  %v1652_v51 = vsub.f32 %v1534_v56, %v1551_v3  ;;  %845 = vmatprep.mubr.f32.mxu1 %v1436_v0 }
  0x43   :  { %v208_v36 = vand.u32 4294901760, %v207_v22  ;;  %1251 = vmatprep.subr.bf16.mxu0 %v1250_v14  ;;  %v765_v32 = vand.u32 4294901760, %v764_v30  ;;  %v212_v54 = vand.u32 4294901760, %v1648_v31  ;;  %v218_v58 = vand.u32 4294901760, %v1563_v9 }
  0x44   :  { %v777_v53 = vand.u32 4294901760, %v776_v13  ;;  %1299 = vmatprep.subr.bf16.mxu1 %v1298_v34  ;;  %v781_v55 = vand.u32 4294901760, %v1652_v51  ;;  %v787_v15 = vand.u32 4294901760, %v1582_v21  ;;  %v1254_v34 = vpack.c.bf16 %v1490_v18, %v1488_v17 }
  0x45   :  { %v1252_v57 = vpack.c.bf16 %v208_v36, %v196_v35  ;;  %v213_v56 = vsub.f32 %v1648_v31, %v212_v54  ;;  %v219_v63 = vsub.f32 %v1563_v9, %v218_v58  ;;  %v1320_v17 = vpack.c.bf16 %v751_v44, %v739_v37 }
  0x46   :  { %v1300_v22 = vpack.c.bf16 %v777_v53, %v765_v32  ;;  %v782_v5 = vsub.f32 %v1652_v51, %v781_v55  ;;  %v788_v14 = vsub.f32 %v1582_v21, %v787_v15  ;;  %v1302_v32 = vpack.c.bf16 %v1496_v24, %v1492_v19 }
  0x47   :  { %1253 = vmatpush1.bf16.msra.mxu0 %v1252_v57  ;;  %v214_v30 = vand.u32 4294901760, %v213_v56  ;;  %v220_v13 = vand.u32 4294901760, %v219_v63  ;;  %v1256_v57 = vpack.c.bf16 %v1503_v28, %v1500_v26  ;;  %v1304_v53 = vpack.c.bf16 %v1511_v41, %v1509_v40 }
  0x48   :  { %1301 = vmatpush1.bf16.msra.mxu1 %v1300_v22  ;;  %v783_v35 = vand.u32 4294901760, %v782_v5  ;;  %v789_v36 = vand.u32 4294901760, %v788_v14  ;;  %v1258_v22 = vpack.c.bf16 %v1517_v47, %v1513_v42  ;;  %v1306_v56 = vpack.c.bf16 %v1524_v50, %v1521_v49 }
  0x49   :  { %215 = vmatprep.subr.mxu0 %v214_v30  ;;  %v1260_v63 = vpack.c.bf16 %v1539_v60, %v1526_v52  ;;  %v1308_v5 = vpack.c.bf16 %v1548_v2, %v1541_v61  ;;  %v1318_v14 = vpack.c.bf16 %v745_v11, %v733_v8  ;;  %v1272_v30 = vpack.c.bf16 %v182_v29, %v170_v27 }
  0x4a   :  { %784 = vmatprep.subr.mxu1 %v783_v35  ;;  %v1274_v18 = vpack.c.bf16 %v200_v12, %v188_v45  ;;  %v1793_v19 = vand.u32 4294901760, %v1521_v49  ;;  %v1794_v24 = vand.u32 4294901760, %v1524_v50  ;;  %v1795_v28 = vand.u32 4294901760, %v1539_v60 }
  0x4b   :  { %221 = vmatpush1.msra.mxu0 %v220_v13  ;;  %v1796_v41 = vand.u32 4294901760, %v1541_v61  ;;  %v1797_v42 = vand.u32 4294901760, %v1548_v2 }
  0x4c   :  { %790 = vmatpush1.msra.mxu1 %v789_v36  ;;  %1255 = vmatprep.subr.bf16.mxu0 %v1254_v34  ;;  %v1322_v26 = vpack.c.bf16 %v1794_v24, %v1793_v19  ;;  %v1276_v40 = vpack.c.bf16 %v1795_v28, %v194_v38 }
  0x4d   :  { %1303 = vmatprep.subr.bf16.mxu1 %v1302_v32  ;;  %278 = vmatmul.mubr.f32.vlgmr.msra.gmra.mrb[0].mxu0 %v1579_v20  ;;  %v1324_v47 = vpack.c.bf16 %v1797_v42, %v1796_v41 }
  0x4e   :  { %1257 = vmatpush1.bf16.msra.mxu0 %v1256_v57  ;;  %847 = vmatmul.mubr.f32.vlgmr.msra.gmra.mrb[0].mxu1 %v1579_v20 }
  0x4f   :  { %1305 = vmatpush1.bf16.msra.mxu1 %v1304_v53  ;;  %1259 = vmatprep.subr.bf16.mxu0 %v1258_v22 }
  0x50   :  { %1307 = vmatprep.subr.bf16.mxu1 %v1306_v56  ;;  %368 = vmatprep.mubr.f32.mxu0 %v1436_v0 }
  0x51   :  { %937 = vmatprep.mubr.f32.mxu1 %v1436_v0 }
  0x52   :  { %1261 = vmatpush1.bf16.msra.mxu0 %v1260_v63 }
  0x53   :  { %1309 = vmatpush1.bf16.msra.mxu1 %v1308_v5  ;;  %310 = vmatprep.subr.mxu0 %v1648_v31 }
  0x54   :  { %879 = vmatprep.subr.mxu1 %v1652_v51 }
  0x56   :  { %313 = vmatpush1.msra.mxu0 %v1563_v9 }
  0x57   :  { %882 = vmatpush1.msra.mxu1 %v1582_v21  ;;  %1263 = vmatprep.subr.bf16.mxu0 %v1486_v16 }
  0x58   :  { %1311 = vmatprep.subr.bf16.mxu1 %v1494_v23  ;;  %371 = vmatmul.mubr.f32.vlgmr.msra.gmra.mrb[0].mxu0 %v1591_v33 }
  0x59   :  { %1265 = vmatpush1.bf16.msra.mxu0 %v1498_v25  ;;  %940 = vmatmul.mubr.f32.vlgmr.msra.gmra.mrb[0].mxu1 %v1591_v33  ;;  %v1270_v33 = vpack.c.bf16 %v176_v7, %v164_v6 }
  0x5a   :  { %1313 = vmatpush1.bf16.msra.mxu1 %v1507_v39  ;;  %1267 = vmatprep.subr.bf16.mxu0 %v1515_v46 }
  0x5b   :  { %1315 = vmatprep.subr.bf16.mxu1 %v1519_v48  ;;  %451 = vmatprep.mubr.f32.mxu0 %v1436_v0 }
  0x5c   :  { %1020 = vmatprep.mubr.f32.mxu1 %v1436_v0 }
  0x5d   :  { %1269 = vmatpush1.bf16.msra.mxu0 %v1537_v59 }
  0x5e   :  { %1317 = vmatpush1.bf16.msra.mxu1 %v1546_v1  ;;  %394 = vmatprep.subr.mxu0 %v1544_v62 }
  0x5f   :  { %963 = vmatprep.subr.mxu1 %v1551_v3 }
  0x61   :  { %396 = vmatpush1.msra.mxu0 %v1553_v4 }
  0x62   :  { %965 = vmatpush1.msra.mxu1 %v1565_v10  ;;  %1271 = vmatprep.subr.bf16.mxu0 %v1270_v33 }
  0x63   :  { %1319 = vmatprep.subr.bf16.mxu1 %v1318_v14  ;;  %455 = vmatmul.mubr.f32.vlgmr.msra.gmra.mrb[0].mxu0 %v1602_v43 }
  0x64   :  { %1273 = vmatpush1.bf16.msra.mxu0 %v1272_v30  ;;  %1024 = vmatmul.mubr.f32.vlgmr.msra.gmra.mrb[0].mxu1 %v1602_v43 }
  0x65   :  { %1321 = vmatpush1.bf16.msra.mxu1 %v1320_v17  ;;  %1275 = vmatprep.subr.bf16.mxu0 %v1274_v18 }
  0x66   :  { %1323 = vmatprep.subr.bf16.mxu1 %v1322_v26  ;;  %555 = vmatprep.mubr.f32.mxu0 %v1436_v0 }
  0x67   :  { %1124 = vmatprep.mubr.f32.mxu1 %v1436_v0 }
  0x68   :  { %1277 = vmatpush1.bf16.msra.mxu0 %v1276_v40 }
  0x69   :  { %1325 = vmatpush1.bf16.msra.mxu1 %v1324_v47  ;;  %496 = vmatprep.subr.mxu0 %v212_v54 }
  0x6a   :  { %1065 = vmatprep.subr.mxu1 %v781_v55 }
  0x6c   :  { %500 = vmatpush1.msra.mxu0 %v218_v58 }
  0x6d   :  { %1069 = vmatpush1.msra.mxu1 %v787_v15  ;;  %1279 = vmatprep.subr.bf16.mxu0 %v1486_v16 }
  0x6e   :  { %1327 = vmatprep.subr.bf16.mxu1 %v1494_v23  ;;  %557 = vmatmul.mubr.f32.vlgmr.msra.gmra.mrb[0].mxu0 %v1579_v20 }
  0x6f   :  { %1281 = vmatpush1.bf16.msra.mxu0 %v1498_v25  ;;  %1126 = vmatmul.mubr.f32.vlgmr.msra.gmra.mrb[0].mxu1 %v1579_v20 }
  0x70   :  { %1329 = vmatpush1.bf16.msra.mxu1 %v1507_v39  ;;  %1283 = vmatprep.subr.bf16.mxu0 %v1515_v46 }
  0x71   :  { %1331 = vmatprep.subr.bf16.mxu1 %v1519_v48  ;;  %637 = vmatprep.mubr.f32.mxu0 %v1436_v0 }
  0x72   :  { %1206 = vmatprep.mubr.f32.mxu1 %v1436_v0 }
  0x73   :  { %1285 = vmatpush1.bf16.msra.mxu0 %v1537_v59 }
  0x74   :  { %1333 = vmatpush1.bf16.msra.mxu1 %v1546_v1  ;;  %580 = vmatprep.subr.mxu0 %v1544_v62 }
  0x75   :  { %1149 = vmatprep.subr.mxu1 %v1551_v3 }
  0x77   :  { %582 = vmatpush1.msra.mxu0 %v1553_v4 }
  0x78   :  { %1151 = vmatpush1.msra.mxu1 %v1565_v10  ;;  %639 = vmatmul.mubr.f32.vlgmr.msra.gmra.mrb[0].mxu0 %v1579_v20 }
  0x79   :  { %1208 = vmatmul.mubr.f32.vlgmr.msra.gmra.mrb[0].mxu1 %v1579_v20 }
 0x14b   :  { %v640_v16 = vpop.f32.mrb[0].mxu0 }
 0x14c   :  { %v1214_v0 = vmax.f32 %v640_v16, 0.0  ;;  %v1209_v23 = vpop.f32.mrb[0].mxu1  ;;  %v642_v25 = vpop.f32.mrb[1].mxu0 }
 0x14d   :  { %v1216_v39 = vmax.f32 %v1209_v23, 0.0  ;;  %v1215_v46 = vmax.f32 %v642_v25, 0.0  ;;  %v1211_v48 = vpop.f32.mrb[1].mxu1 }
 0x14e   :  { %1218 = vst [vmem:[#allocation7] sm:$0xff] %v1214_v0  ;;  %v1217_v49 = vmax.f32 %v1211_v48, 0.0 }
 0x14f   :  { %1220 = vst [vmem:[#allocation7 + $0x10] sm:$0xff] %v1216_v39  ;;  %1219 = vst [vmem:[#allocation7 + $0x8] sm:$0xff] %v1215_v46 }
 0x150   :  { %1221 = vst [vmem:[#allocation7 + $0x18] sm:$0xff] %v1217_v49 }
 0x151   :  { %1415 = shalt.err (!%p1412_p6)
}
 0x152   :  { %s1416_s10 = scalar_lea.hbm %s1787_s2, 512 }
 0x153   :  { %p1417_p7 = scmp.ne.s32.totalorder %s1787_s2, %s1416_s10  ;;  %p1420_p8 = scmp.lt.u32.totalorder %s1416_s10, %s1787_s2 }
 0x155   :  { %p1422_p9 = pnand %p1420_p8, %p1417_p7 }
 0x157   :  { %1425 = shalt.err (!%p1422_p9)
}
 0x158   :  { %1231 = dma.vmem_to_hbm [thread:$0]  %s1229_s6, 512, %s1787_s2, [#allocation4]  }
 0x159   :  { %1430 = dma.done.wait [#allocation4], 512  }
 0x15a   :  { %1431 = vsyncadd [#allocation4], 4294966784 }
 0x15b   :  { %1235 = vsyncpa [#allocation3], 1 }
 0x15c   :  { %1236 = vsyncpa [#allocation6], 1 }
 0x15d   :  { %1237 = vsyncpa [#allocation4], 1 }

</bundles_post_ra>
